<compile_context>
chip_gen: v6e
topology: v6e:2x2x1
jax: 0.10.0
libtpu: 0.0.40
codegen_flags: <defaults>
</compile_context>

<pallas_src>
import math

import jax
import jax.numpy as jnp
from jax import lax
from jax.experimental import pallas as pl
from jax.experimental.pallas import tpu as pltpu


def _round_up(n, m):
    return ((n + m - 1) // m) * m


def _vmem_budget_bytes():
    """~3/4 of physical VMEM: ~96 MiB on v5e/v6e (128 MiB), ~48 MiB on v7x (64 MiB)."""
    cap = 64 * 1024 * 1024
    try:
        info = pltpu.get_tpu_info()
        cap = int(getattr(info, "vmem_capacity_bytes", cap))
    except Exception:
        pass
    budget = cap * 3 // 4
    return int(min(max(budget, 32 * 1024 * 1024), 112 * 1024 * 1024))


# ------------------------------------------------------------------
# Kernel 1: fused, row-tiled input projection:  (N, D) @ (D, 4H) + b
# Weights stay VMEM-resident; activations tiled over rows ("parallel").
# ------------------------------------------------------------------
def proj_kernel(x_ref, w_ref, b_ref, o_ref):
    acc = jnp.dot(x_ref[...], w_ref[...], preferred_element_type=jnp.float32)
    o_ref[...] = (acc + b_ref[...]).astype(o_ref.dtype)


def input_projection(x2d, w, b, *, out_dtype, vmem_budget):
    """x2d: (N, D), w: (D, O), b: (O,) f32 -> (N, O) out_dtype."""
    N, D = x2d.shape
    O = w.shape[1]
    in_b = jnp.dtype(x2d.dtype).itemsize
    w_b = jnp.dtype(w.dtype).itemsize
    out_b = jnp.dtype(out_dtype).itemsize

    # Derive row tile from the VMEM budget (double-buffered x/out tiles plus
    # double-buffered resident weight + bias), then clamp and align.
    fixed = 2 * D * O * w_b + 2 * O * 4
    per_row = 2 * (D * in_b + O * out_b)
    tile_n = (vmem_budget - fixed) // max(per_row, 1) if vmem_budget > fixed else 256
    tile_n = int(max(64, min(1024, tile_n)))
    tile_n = (tile_n // 16) * 16
    tile_n = min(tile_n, _round_up(N, 16))

    n_pad = _round_up(N, tile_n)
    if n_pad != N:
        x2d = jnp.pad(x2d, ((0, n_pad - N), (0, 0)))

    out = pl.pallas_call(
        proj_kernel,
        out_shape=jax.ShapeDtypeStruct((n_pad, O), out_dtype),
        grid_spec=pltpu.PrefetchScalarGridSpec(
            num_scalar_prefetch=0,
            grid=(n_pad // tile_n,),
            in_specs=[
                pl.BlockSpec((tile_n, D), lambda i: (i, 0)),  # activations, tiled
                pl.BlockSpec((D, O), lambda i: (0, 0)),       # weight, resident
                pl.BlockSpec((1, O), lambda i: (0, 0)),       # bias, resident
            ],
            out_specs=pl.BlockSpec((tile_n, O), lambda i: (i, 0)),
        ),
        compiler_params=pltpu.CompilerParams(
            dimension_semantics=("parallel",),
            vmem_limit_bytes=int(vmem_budget),
        ),
    )(x2d, w, b.reshape(1, O))
    return out[:N]


# ------------------------------------------------------------------
# Kernel 2: sequential LSTMP recurrence.
# Grid = (batch tiles ["parallel"], time chunks of K steps ["arbitrary"]).
# State (c_t, r_t) lives in VMEM scratch across time chunks; within a chunk it
# is carried through a (partially unrolled) fori_loop in registers.
# ------------------------------------------------------------------
def make_lstmp_recurrent_kernel(drop_scale, K, H, compute_dtype, unroll):
    cd = compute_dtype

    def kernel(wx_ref, u_all_ref, urh_ref, r_out_ref, c_scr, r_scr):
        t = pl.program_id(1)

        @pl.when(t == 0)
        def _():
            c_scr[...] = jnp.zeros_like(c_scr)
            r_scr[...] = jnp.zeros_like(r_scr)

        u_all = u_all_ref[...]   # (P_pad, 4H) compute dtype, VMEM-resident
        urh = urh_ref[...]       # (H, P_pad)  compute dtype, VMEM-resident

        def step(kk, carry):
            ct, rt = carry
            # One fused (TB, P_pad) x (P_pad, 4H) matmul for all four gates.
            gates = wx_ref[kk].astype(jnp.float32) + jnp.dot(
                rt.astype(cd), u_all, preferred_element_type=jnp.float32)
            # Gate order [f, i, o, c]: one wide sigmoid + one tanh.
            sig = jax.nn.sigmoid(gates[:, : 3 * H])
            ft = sig[:, 0 * H:1 * H]
            it = sig[:, 1 * H:2 * H]
            ot = sig[:, 2 * H:3 * H]
            cc = jnp.tanh(gates[:, 3 * H:4 * H])
            ic = it * cc
            if drop_scale != 1.0:          # test-mode: specialize the common case
                ic = ic * drop_scale
            ct = ic + ft * ct
            ht = ot * jnp.tanh(ct)
            rt = jnp.dot(ht.astype(cd), urh, preferred_element_type=jnp.float32)
            r_out_ref[kk] = rt
            return ct, rt

        ct, rt = lax.fori_loop(0, K, step, (c_scr[...], r_scr[...]),
                               unroll=unroll)
        # Persist state only once per chunk.
        c_scr[...] = ct
        r_scr[...] = rt

    return kernel


def lstmp_layer_pallas(x, params, drop=0.0, compute_dtype=jnp.bfloat16):
    """One LSTMP layer (unidirectional, test mode). x: (T, B, D) f32 -> (T, B, P) f32."""
    T, B, D = x.shape
    H = params["wfx"].shape[1]
    P = params["urh"].shape[1]
    H4 = 4 * H

    budget = _vmem_budget_bytes()
    itemsize = jnp.dtype(compute_dtype).itemsize
    su = 8 if itemsize == 4 else 16          # sublane multiple (f32 / bf16)

    # --- padding: batch to sublane multiple, P to lane-dense multiple of 128 ---
    B_pad = _round_up(B, su)
    TB = B_pad if B_pad <= 64 else math.gcd(B_pad, 64)   # batch tile (divides B_pad)
    P_pad = _round_up(max(P, 1), 128)

    # --- time chunk K, derived from the VMEM budget; pad T to a multiple of K ---
    per_step = 2 * TB * (H4 * itemsize + P_pad * 4)       # dbl-buffered in + out rows
    K = int(max(1, min(T, 16, (budget // 3) // max(per_step, 1))))
    T_pad = _round_up(T, K)
    unroll = int(min(K, 8))

    xp = x
    if T_pad != T or B_pad != B:
        xp = jnp.pad(x, ((0, T_pad - T), (0, B_pad - B), (0, 0)))

    # ---- hot path 1: fused, tiled (T*B, D) x (D, 4H) input projection ----
    # Gate order is [f, i, o, c] everywhere.
    w_all = jnp.concatenate(
        [params["wfx"], params["wix"], params["wox"], params["wcx"]],
        axis=1).astype(compute_dtype)
    b_all = jnp.concatenate(
        [params["bfx"], params["bix"], params["box"], params["bcx"]],
        axis=0).astype(jnp.float32)
    x2d = xp.reshape(T_pad * B_pad, D).astype(compute_dtype)
    proj = input_projection(x2d, w_all, b_all,
                            out_dtype=compute_dtype, vmem_budget=budget)
    proj = proj.reshape(T_pad, B_pad, H4)    # ONE array: no jnp.split / extra copies

    # Packed recurrent weights: one (P_pad, 4H) matmul per step [f, i, o, c].
    u_all = jnp.concatenate(
        [params["ufr"], params["uir"], params["uor"], params["ucr"]], axis=1)
    u_all = jnp.pad(u_all, ((0, P_pad - P), (0, 0))).astype(compute_dtype)
    urh = jnp.pad(params["urh"], ((0, 0), (0, P_pad - P))).astype(compute_dtype)

    # ---- hot path 2: time recurrence ----
    kernel = make_lstmp_recurrent_kernel(1.0 - drop, K, H, compute_dtype, unroll)

    r = pl.pallas_call(
        kernel,
        out_shape=jax.ShapeDtypeStruct((T_pad, B_pad, P_pad), jnp.float32),
        grid_spec=pltpu.PrefetchScalarGridSpec(
            num_scalar_prefetch=0,
            grid=(B_pad // TB, T_pad // K),
            in_specs=[
                pl.BlockSpec((K, TB, H4), lambda b, t: (t, b, 0)),   # gate preacts
                pl.BlockSpec((P_pad, H4), lambda b, t: (0, 0)),      # U_all resident
                pl.BlockSpec((H, P_pad), lambda b, t: (0, 0)),       # urh resident
            ],
            out_specs=pl.BlockSpec((K, TB, P_pad), lambda b, t: (t, b, 0)),
            scratch_shapes=[pltpu.VMEM((TB, H), jnp.float32),    # c_t
                            pltpu.VMEM((TB, P_pad), jnp.float32)],  # r_t
        ),
        compiler_params=pltpu.CompilerParams(
            dimension_semantics=("parallel", "arbitrary"),   # batch x time
            vmem_limit_bytes=int(budget),
        ),
    )(proj, u_all, urh)
    return r[:T, :B, :P]


# ------------------------------------------------------------------
# Pure-JAX reference (mirrors the PyTorch forward) for validation.
# ------------------------------------------------------------------
def lstmp_layer_ref(x, params, drop=0.0):
    T, B, D = x.shape
    H = params["wfx"].shape[1]
    P = params["urh"].shape[1]
    wfx = x @ params["wfx"] + params["bfx"]
    wix = x @ params["wix"] + params["bix"]
    wox = x @ params["wox"] + params["box"]
    wcx = x @ params["wcx"] + params["bcx"]
    ct = jnp.zeros((B, H), jnp.float32)
    rt = jnp.zeros((B, P), jnp.float32)
    drop_mask = 1.0 - drop
    outs = []
    for k in range(T):
        ft = jax.nn.sigmoid(wfx[k] + rt @ params["ufr"])
        it = jax.nn.sigmoid(wix[k] + rt @ params["uir"])
        ot = jax.nn.sigmoid(wox[k] + rt @ params["uor"])
        ct = it * jnp.tanh(wcx[k] + rt @ params["ucr"]) * drop_mask + ft * ct
        ht = ot * jnp.tanh(ct)
        rt = ht @ params["urh"]
        outs.append(rt)
    return jnp.stack(outs)


# ------------------------------------------------------------------
def init_params(key, D, H, P):
    keys = jax.random.split(key, 13)
    s = 0.1
    return {
        "wfx": s * jax.random.normal(keys[0], (D, H), jnp.float32),
        "wix": s * jax.random.normal(keys[1], (D, H), jnp.float32),
        "wox": s * jax.random.normal(keys[2], (D, H), jnp.float32),
        "wcx": s * jax.random.normal(keys[3], (D, H), jnp.float32),
        "bfx": s * jax.random.normal(keys[4], (H,), jnp.float32),
        "bix": s * jax.random.normal(keys[5], (H,), jnp.float32),
        "box": s * jax.random.normal(keys[6], (H,), jnp.float32),
        "bcx": s * jax.random.normal(keys[7], (H,), jnp.float32),
        "ufr": s * jax.random.normal(keys[8], (P, H), jnp.float32),
        "uir": s * jax.random.normal(keys[9], (P, H), jnp.float32),
        "uor": s * jax.random.normal(keys[10], (P, H), jnp.float32),
        "ucr": s * jax.random.normal(keys[11], (P, H), jnp.float32),
        "urh": s * jax.random.normal(keys[12], (H, P), jnp.float32),
    }


if __name__ == "__main__":
    T, B, D = 8, 2, 16      # seq len, batch, input dim
    H, P = 32, 16           # lstm_lay, proj_lay

    key = jax.random.PRNGKey(0)
    k_x, k_p, k_x2 = jax.random.split(key, 3)
    x = jax.random.normal(k_x, (T, B, D), jnp.float32)
    params = init_params(k_p, D, H, P)
    ref = lstmp_layer_ref(x, params, drop=0.0)

    # Strict correctness check: f32 compute path.
    out_f32 = jax.block_until_ready(
        lstmp_layer_pallas(x, params, drop=0.0, compute_dtype=jnp.float32))
    assert out_f32.shape == (T, B, P)
    assert jnp.allclose(out_f32, ref, atol=1e-5, rtol=1e-5), "f32 mismatch vs reference"

    # Fast path (default): bf16 MXU operands + bf16 proj intermediate.
    out_bf16 = jax.block_until_ready(lstmp_layer_pallas(x, params, drop=0.0))
    assert out_bf16.shape == (T, B, P)
    assert jnp.allclose(out_bf16, ref, atol=5e-2, rtol=5e-2), "bf16 mismatch vs reference"

    # Awkward shapes: exercises T padding (K=16, T=19 -> T_pad=32) and B padding.
    T2, B2 = 19, 3
    x2 = jax.random.normal(k_x2, (T2, B2, D), jnp.float32)
    ref2 = lstmp_layer_ref(x2, params, drop=0.0)
    out2 = jax.block_until_ready(
        lstmp_layer_pallas(x2, params, drop=0.0, compute_dtype=jnp.float32))
    assert out2.shape == (T2, B2, P)
    assert jnp.allclose(out2, ref2, atol=1e-5, rtol=1e-5), "padded-shape mismatch vs reference"

    # TODO(synk): bidirectional / per-layer batchnorm-laynorm / train-mode
    # bernoulli-dropout / non-tanh activation variants of LSTMP are not
    # exercised in this modeled config.
    print("KERNEL_OK")
</pallas_src>

<mosaic_0001>
module attributes {stable_mosaic.version = 11 : i64} {
  func.func @proj_kernel(%arg0: i32, %arg1: memref<64x16xf32, #tpu.memory_space<vmem>>, %arg2: memref<16x128xf32, #tpu.memory_space<vmem>>, %arg3: memref<1x128xf32, #tpu.memory_space<vmem>>, %arg4: memref<64x128xf32, #tpu.memory_space<vmem>>) attributes {dimension_semantics = [#tpu.dimension_semantics<parallel>], iteration_bounds = array<i64: 1>, scalar_prefetch = 0 : i64, scratch_operands = 0 : i64, tpu.core_type = #tpu.core_type<tc>, window_params = [{transform_indices = @transform_0, window_bounds = array<i64: 64, 16>}, {pipeline_mode = #tpu.pipeline_mode<synchronous>, transform_indices = @transform_1, window_bounds = array<i64: 16, 128>}, {pipeline_mode = #tpu.pipeline_mode<synchronous>, transform_indices = @transform_2, window_bounds = array<i64: 1, 128>}, {transform_indices = @transform_3, window_bounds = array<i64: 64, 128>}]} {
    %c0 = arith.constant 0 : index
    %c0_0 = arith.constant 0 : index
    %0 = vector.load %arg1[%c0, %c0_0] : memref<64x16xf32, #tpu.memory_space<vmem>>, vector<64x16xf32>
    %c0_1 = arith.constant 0 : index
    %c0_2 = arith.constant 0 : index
    %1 = vector.load %arg2[%c0_1, %c0_2] : memref<16x128xf32, #tpu.memory_space<vmem>>, vector<16x128xf32>
    %cst = arith.constant dense<0.000000e+00> : vector<64x128xf32>
    %2 = tpu.matmul %0, %1, %cst {dimension_numbers = #tpu.dot_dimension_numbers<[1], [0], [0], [1], [0, 0, 1, 1], [], []>} : vector<64x16xf32>, vector<16x128xf32>, vector<64x128xf32> -> vector<64x128xf32>
    %c0_3 = arith.constant 0 : index
    %c0_4 = arith.constant 0 : index
    %3 = vector.load %arg3[%c0_3, %c0_4] : memref<1x128xf32, #tpu.memory_space<vmem>>, vector<1x128xf32>
    %4 = vector.broadcast %3 : vector<1x128xf32> to vector<64x128xf32>
    %5 = arith.addf %2, %4 : vector<64x128xf32>
    %c0_5 = arith.constant 0 : index
    %c0_6 = arith.constant 0 : index
    %6 = vector.load %arg4[%c0_5, %c0_6] : memref<64x128xf32, #tpu.memory_space<vmem>>, vector<64x128xf32>
    tpu.vector_store %arg4[%c0_5, %c0_6], %5 {strides = array<i32>} : memref<64x128xf32, #tpu.memory_space<vmem>>, vector<64x128xf32>,
    return
  }
  func.func @transform_0(%arg0: i32) -> (i32, i32) {
    %c0_i32 = arith.constant 0 : i32
    %c0_i32_0 = arith.constant 0 : i32
    return %arg0, %c0_i32 : i32, i32
  }
  func.func @transform_1(%arg0: i32) -> (i32, i32) {
    %c0_i32 = arith.constant 0 : i32
    %c0_i32_0 = arith.constant 0 : i32
    %c0_i32_1 = arith.constant 0 : i32
    return %c0_i32, %c0_i32_0 : i32, i32
  }
  func.func @transform_2(%arg0: i32) -> (i32, i32) {
    %c0_i32 = arith.constant 0 : i32
    %c0_i32_0 = arith.constant 0 : i32
    %c0_i32_1 = arith.constant 0 : i32
    return %c0_i32, %c0_i32_0 : i32, i32
  }
  func.func @transform_3(%arg0: i32) -> (i32, i32) {
    %c0_i32 = arith.constant 0 : i32
    %c0_i32_0 = arith.constant 0 : i32
    return %arg0, %c0_i32 : i32, i32
  }
}

</mosaic_0001>

<bundles_post_ra>
// kernel: tpu_custom_call.1
= control target key start
LH: loop header
LB: loop body
LE: loop exit
PB: predicated region body
PF: predicated region fallthrough
CT: control target
= control target key end

     0   :  { %vm32_vm0 = vcmask 130048   ;;  %s317_s0 = inlined_call_operand.vmem [shape: f32[64,16], index: 0, kind: input, shape index: {}]   ;;  %s318_s1 = inlined_call_operand.vmem [shape: f32[16,128], index: 1, kind: input, shape index: {}]   ;;  %s319_s2 = inlined_call_operand.vmem [shape: f32[1,128], index: 2, kind: input, shape index: {}]   ;;  %s320_s3 = inlined_call_operand.hbm [shape: f32[64,128], index: 3, kind: output, shape index: {}]  }
   0x1   :  { %v24_v0 = vld [vmem:[%s318_s1 + $0x8] sm:$0xff]  ;;  %v23_v1 = vld [vmem:[%s318_s1] sm:$0xff] }
   0x2   :  { %205 = vmatprep.subr.mxu0 %v24_v0  ;;  %221 = vmatprep.subr.mxu1 %v24_v0  ;;  %v15_v2 = vld [vmem:[%s317_s0] sm:$0xff]  ;;  %v16_v4 = vld [vmem:[%s317_s0 + $0x8] sm:$0xff] }
   0x3   :  { %206 = vmatpush3.msra.mxu0 %v24_v0  ;;  %223 = vmatpush3.msra.mxu1 %v24_v0  ;;  %v19_v3 = vld [vmem:[%s317_s0 + $0x20] sm:$0xff]  ;;  %v20_v5 = vld [vmem:[%s317_s0 + $0x28] sm:$0xff] }
   0x4   :  { %207 = vmatprep.subr.mxu0 %v23_v1  ;;  %222 = vmatprep.subr.mxu1 %v23_v1 }
   0x5   :  { %8 = vsyncpa [#allocation3], 0  ;;  %208 = vmatpush3.msra.mxu0 %v23_v1  ;;  %224 = vmatpush3.msra.mxu1 %v23_v1  ;;  %v17_v6 = vld [vmem:[%s317_s0 + $0x10] sm:$0xff]  ;;  %v18_v8 = vld [vmem:[%s317_s0 + $0x18] sm:$0xff]  ;;  %s250_s6 = smov [#allocation2]  }
   0x6   :  { %v21_v7 = vld [vmem:[%s317_s0 + $0x30] sm:$0xff]  ;;  %209 = vmatprep.mubr.msk.f32.mxu0 %vm32_vm0, %v15_v2  ;;  %215 = vmatprep.mubr.msk.f32.mxu1 %vm32_vm0, %v19_v3  ;;  %v22_v9 = vld [vmem:[%s317_s0 + $0x38] sm:$0xff]  ;;  %v186_v10 = vld [vmem:[%s319_s2] ss:$0 sm:$0xff]  ;;  %s175_s0 = sshll.u32 %s250_s6, 4  ;;  %s176_s0 = int_to_ptr.vmem [resolvable:$true] %s175_s0 }
   0x7   :  { %210 = vmatmul.mubr.msk.f32.vlgmr.msra.gmra.mxu0 %vm32_vm0, %v16_v4  ;;  %216 = vmatmul.mubr.msk.f32.vlgmr.msra.gmra.mxu1 %vm32_vm0, %v20_v5  ;;  %s228_s2 = scalar_lea.vmem %s176_s0, 1024  ;;  %p233_p1 = scmp.lt.s32.totalorder %s176_s0, %s176_s0 }
   0x8   :  { %212 = vmatprep.mubr.msk.f32.mxu0 %vm32_vm0, %v17_v6  ;;  %218 = vmatprep.mubr.msk.f32.mxu1 %vm32_vm0, %v21_v7  ;;  %p229_p0 = scmp.ne.s32.totalorder %s176_s0, %s228_s2  ;;  %p234_p2 = scmp.lt.s32.totalorder %s228_s2, %s228_s2 }
   0xa   :  { %p235_p3 = por %p234_p2, %p233_p1 }
   0xb   :  { %213 = vmatmul.mubr.msk.f32.gmra.mxu0 %vm32_vm0, %v18_v8  ;;  %219 = vmatmul.mubr.msk.f32.gmra.mxu1 %vm32_vm0, %v22_v9 }
   0xc   :  { %p236_p4 = pnand %p235_p3, %p229_p0 }
  0xc7   :  { %v211_v11 = vpop.f32.mrf.mxu0  ;;  %v217_v12 = vpop.f32.mrf.mxu1 }
  0xc8   :  { %v129_v13 = vadd.f32 %v211_v11, %v186_v10  ;;  %v149_v14 = vadd.f32 %v217_v12, %v186_v10 }
  0xc9   :  { %v123_v15 = vpop.f32.mrf.mxu0  ;;  %v143_v16 = vpop.f32.mrf.mxu1 }
  0xca   :  { %163 = vst [vmem:[#allocation2 + $0x8] sm:$0xff] %v129_v13  ;;  %167 = vst [vmem:[#allocation2 + $0x28] sm:$0xff] %v149_v14  ;;  %v124_v17 = vadd.f32 %v186_v10, %v123_v15  ;;  %v144_v18 = vadd.f32 %v186_v10, %v143_v16 }
  0xcb   :  { %v214_v19 = vpop.f32.mrf.mxu0  ;;  %v220_v20 = vpop.f32.mrf.mxu1 }
  0xcc   :  { %162 = vst [vmem:[#allocation2] sm:$0xff] %v124_v17  ;;  %166 = vst [vmem:[#allocation2 + $0x20] sm:$0xff] %v144_v18  ;;  %v139_v21 = vadd.f32 %v214_v19, %v186_v10  ;;  %v159_v22 = vadd.f32 %v220_v20, %v186_v10 }
  0xcd   :  { %v133_v23 = vpop.f32.mrf.mxu0  ;;  %v153_v24 = vpop.f32.mrf.mxu1 }
  0xce   :  { %165 = vst [vmem:[#allocation2 + $0x18] sm:$0xff] %v139_v21  ;;  %169 = vst [vmem:[#allocation2 + $0x38] sm:$0xff] %v159_v22  ;;  %v134_v25 = vadd.f32 %v186_v10, %v133_v23  ;;  %v154_v26 = vadd.f32 %v186_v10, %v153_v24 }
  0xd0   :  { %164 = vst [vmem:[#allocation2 + $0x10] sm:$0xff] %v134_v25  ;;  %168 = vst [vmem:[#allocation2 + $0x30] sm:$0xff] %v154_v26 }
  0xd1   :  { %239 = shalt.err (!%p236_p4)
}
  0xd2   :  { %s251_s7 = smov 128   ;;  %s252_s8 = smov 8  }
  0xd3   :  { %181 = dma.vmem_to_hbm [thread:$0]  %s176_s0, 1024, %s320_s3, [#allocation3], %s251_s7, %s251_s7, %s252_s8  }
  0xd4   :  { %248 = dma.done.wait [#allocation3], 1024  }
  0xd5   :  { %249 = vsyncadd [#allocation3], 4294966272 }
  0xd6   :  { %185 = vsyncpa [#allocation3], 1 }

</bundles_post_ra>
